<compile_context>
chip_gen: v6e
topology: v6e:2x2x1
jax: 0.10.0
libtpu: 0.0.40
codegen_flags: <defaults>
</compile_context>

<pallas_src>
import jax
import jax.numpy as jnp
from jax.experimental import pallas as pl
from jax.experimental.pallas import tpu as pltpu

_TARGET_TILE_BYTES = 2 << 20  # ~2 MiB per input block (double-buffered by Pallas)


def _choose_tile_rows(B: int, D: int) -> int:
    """Batch-tile height: ~2 MiB of rows, multiple of 8 (sublane), and capped at
    ceil(B/2) so the parallel grid keeps >= 2 steps for v7x's two TensorCores."""
    t = max(8, ((_TARGET_TILE_BYTES // (D * 4)) // 8) * 8)
    if B > 8:
        half = ((-(-B // 2)) + 7) // 8 * 8  # ceil(B/2) rounded up to 8
        t = min(t, half)
    return t


def threshold_kernel(x_ref, w_ref, b_ref, o_ref):
    # x_ref: (TB, D)  row-slab of the batch (batch on sublanes, D on lanes)
    # w_ref: (1, D)   weight row (PyTorch layout), VMEM-resident
    # b_ref: (1, 1)   bias scalar in SMEM
    # o_ref: (TB, 1)  per-row logits -> sigmoid
    s = jnp.sum(x_ref[...] * w_ref[...], axis=1, keepdims=True)  # VPU mul + XLU lane reduce
    o_ref[...] = jax.nn.sigmoid(s + b_ref[0, 0])                 # EUP sigmoid


def _threshold_net_impl(x, w, bias):
    """x: (B, D) f32, w: (1, D) f32 (PyTorch Linear weight layout),
    bias: (1, 1) f32  ->  (B, 1) f32  ==  sigmoid(x @ w.T + bias)."""
    B, D = x.shape
    tb = _choose_tile_rows(B, D)
    grid = (pl.cdiv(B, tb),)

    return pl.pallas_call(
        threshold_kernel,
        out_shape=jax.ShapeDtypeStruct((B, 1), jnp.float32),
        grid=grid,
        in_specs=[
            pl.BlockSpec((tb, D), lambda i: (i, 0)),               # contiguous x row-slab
            pl.BlockSpec((1, D), lambda i: (0, 0)),                # weight row (resident)
            pl.BlockSpec(memory_space=pltpu.MemorySpace.SMEM),     # bias scalar
        ],
        out_specs=pl.BlockSpec((tb, 1), lambda i: (i, 0)),
        compiler_params=pltpu.CompilerParams(
            dimension_semantics=("parallel",),
        ),
    )(x, w, bias)


threshold_net = jax.jit(_threshold_net_impl)


def reference(x, w, bias):
    return jax.nn.sigmoid(x @ w.T + bias)


if __name__ == "__main__":
    key = jax.random.PRNGKey(0)
    kx, kw, kb = jax.random.split(key, 3)

    # Non-multiple-of-8 batch exercises the partial-last-block path and a
    # 2-step "parallel" grid while staying tiny.
    B, input_dim, output_dim = 200, 32, 1

    # Deterministic init mimicking nn.Linear's U(-1/sqrt(D), 1/sqrt(D)).
    bound = 1.0 / jnp.sqrt(jnp.float32(input_dim))
    # PyTorch stores W as (output_dim, input_dim); we keep that layout.
    w = jax.random.uniform(kw, (output_dim, input_dim), jnp.float32,
                           minval=-bound, maxval=bound)
    bias = jax.random.uniform(kb, (1, output_dim), jnp.float32,
                              minval=-bound, maxval=bound)
    x = jax.random.normal(kx, (B, input_dim), jnp.float32)

    out = jax.block_until_ready(threshold_net(x, w, bias))
    ref = reference(x, w, bias)

    assert out.shape == (B, output_dim)
    assert jnp.allclose(out, ref, atol=1e-5, rtol=1e-5)

    print("KERNEL_OK")
</pallas_src>

<mosaic_0001>
module attributes {stable_mosaic.version = 11 : i64} {
  func.func @threshold_kernel(%arg0: i32, %arg1: memref<104x32xf32, #tpu.memory_space<vmem>>, %arg2: memref<1x32xf32, #tpu.memory_space<vmem>>, %arg3: memref<1x1xf32, #tpu.memory_space<smem>>, %arg4: memref<104x1xf32, #tpu.memory_space<vmem>>) attributes {dimension_semantics = [#tpu.dimension_semantics<parallel>], iteration_bounds = array<i64: 2>, scalar_prefetch = 0 : i64, scratch_operands = 0 : i64, tpu.core_type = #tpu.core_type<tc>, window_params = [{transform_indices = @transform_0, window_bounds = array<i64: 104, 32>}, {pipeline_mode = #tpu.pipeline_mode<synchronous>, transform_indices = @transform_1, window_bounds = array<i64: 1, 32>}, {transform_indices = @transform_2, window_bounds = array<i64: 1, 1>}, {transform_indices = @transform_3, window_bounds = array<i64: 104, 1>}]} {
    %c0 = arith.constant 0 : index
    %c0_0 = arith.constant 0 : index
    %0 = vector.load %arg1[%c0, %c0_0] : memref<104x32xf32, #tpu.memory_space<vmem>>, vector<104x32xf32>
    %c0_1 = arith.constant 0 : index
    %c0_2 = arith.constant 0 : index
    %1 = vector.load %arg2[%c0_1, %c0_2] : memref<1x32xf32, #tpu.memory_space<vmem>>, vector<1x32xf32>
    %2 = vector.broadcast %1 : vector<1x32xf32> to vector<104x32xf32>
    %3 = arith.mulf %0, %2 : vector<104x32xf32>
    %cst = arith.constant dense<0.000000e+00> : vector<104xf32>
    %4 = vector.multi_reduction <add>, %3, %cst [1] : vector<104x32xf32> to vector<104xf32>
    %5 = vector.shape_cast %4 : vector<104xf32> to vector<104x1xf32>
    %c0_3 = arith.constant 0 : index
    %c0_4 = arith.constant 0 : index
    %6 = memref.load %arg3[%c0_3, %c0_4] : memref<1x1xf32, #tpu.memory_space<smem>>
    %7 = vector.broadcast %6 : f32 to vector<104x1xf32>
    %8 = arith.addf %5, %7 : vector<104x1xf32>
    %9 = arith.negf %8 : vector<104x1xf32>
    %10 = math.exp %9 : vector<104x1xf32>
    %cst_5 = arith.constant 1.000000e+00 : f32
    %11 = vector.broadcast %cst_5 : f32 to vector<104x1xf32>
    %12 = arith.addf %11, %10 : vector<104x1xf32>
    %13 = arith.divf %11, %12 : vector<104x1xf32>
    %c0_6 = arith.constant 0 : index
    %c0_7 = arith.constant 0 : index
    %14 = vector.load %arg4[%c0_6, %c0_7] : memref<104x1xf32, #tpu.memory_space<vmem>>, vector<104x1xf32>
    tpu.vector_store %arg4[%c0_6, %c0_7], %13 {strides = array<i32>} : memref<104x1xf32, #tpu.memory_space<vmem>>, vector<104x1xf32>,
    return
  }
  func.func @transform_0(%arg0: i32) -> (i32, i32) {
    %c0_i32 = arith.constant 0 : i32
    %c0_i32_0 = arith.constant 0 : i32
    return %arg0, %c0_i32 : i32, i32
  }
  func.func @transform_1(%arg0: i32) -> (i32, i32) {
    %c0_i32 = arith.constant 0 : i32
    %c0_i32_0 = arith.constant 0 : i32
    %c0_i32_1 = arith.constant 0 : i32
    return %c0_i32, %c0_i32_0 : i32, i32
  }
  func.func @transform_2(%arg0: i32) -> (i32, i32) {
    %c0_i32 = arith.constant 0 : i32
    %c0_i32_0 = arith.constant 0 : i32
    %c0_i32_1 = arith.constant 0 : i32
    return %c0_i32, %c0_i32_0 : i32, i32
  }
  func.func @transform_3(%arg0: i32) -> (i32, i32) {
    %c0_i32 = arith.constant 0 : i32
    %c0_i32_0 = arith.constant 0 : i32
    return %arg0, %c0_i32 : i32, i32
  }
}

</mosaic_0001>

<bundles_post_ra>
// kernel: _threshold_net_impl.1
= control target key start
LH: loop header
LB: loop body
LE: loop exit
PB: predicated region body
PF: predicated region fallthrough
CT: control target
= control target key end

     0   :  { %s1114_s0 = inlined_call_operand.vmem [shape: f32[200,32], index: 0, kind: input, shape index: {}]   ;;  %s1115_s1 = inlined_call_operand.vmem [shape: f32[1,32], index: 1, kind: input, shape index: {}]   ;;  %s1116_s2 = inlined_call_operand.<no memory space> [shape: f32[1,1], index: 2, kind: input, shape index: {}]   ;;  %s1117_s3 = inlined_call_operand.vmem [shape: f32[200,1], index: 3, kind: output, shape index: {}]  }
   0x1   :  { %8 = sst [smem:[#allocation2]] %s1116_s2 }
   0x2   :  { %s928_s14 = smov 0   ;;  %s930_s15 = smov 0  }
   0x3   :  { %s932_s16 = smov 0  }
   0x4 LB: > { %s941_s2 = sadd.s32 4294967295, %s871_s16   ;;  %s943_s17 = sadd.s32 1, %s871_s16   ;;  %s871_s16 = sphi %s932_s16, %s1124_s16   ;;  %s867_s15 = sphi %s930_s15, %s1123_s15   ;;  %s863_s14 = sphi %s928_s14, %s1122_s14  }
   0x5   : > { %s86_s18 = ssub.s32 %s871_s16, %s943_s17  ;;  %s89_s19 = sadd.s32 1, %s867_s15 }
   0x6   : > { %p87_p0 = scmp.eq.s32.totalorder %s86_s18, 0  ;;  %p99_p1 = scmp.ne.s32.totalorder %s867_s15, %s863_s14 }
   0x7   : > { %p100_p2 = scmp.eq.s32.totalorder %s941_s2, 1  ;;  %p642_p3 = scmp.ge.s32.totalorder %s871_s16, 1 }
   0x8   : > { %s951_s20 = scalar_select %p87_p0, %s867_s15, %s89_s19  }
   0x9   : > { %p953_p4 = por %p100_p2, %p99_p1  ;;  %p147_p5 = scmp.lt.s32.totalorder %s871_s16, 3 }
   0xb   : > { %p148_p6 = pnand %p642_p3, %p147_p5 }
   0xc   : > { %s958_s22 = smul.u32 (!%p148_p6), 13, %s941_s2  ;;  %s266_s30 = sld [smem:[#allocation2]] (!%p148_p6) }
   0xd   : > { %151 = sbr.rel (%p148_p6) target bundleno = 278 (0x116), region = 32  ;;  %s171_s4 = sand.u32 (!%p148_p6), 1, %s863_s14  }
   0xe   : > { %p179_p7 = scmp.lt.s32.totalorder (!%p148_p6), %s958_s22, 24  ;;  %s671_s5 = smul.u32 (!%p148_p6), 104, %s171_s4 }
  0x10   : > { %s997_s6 = scalar_lea.vmem (!%p148_p6), [#allocation3], %s671_s5  }
  0x12   : > { %s180_s23 = scalar_select %p179_p7, %s958_s22, 24  ;;  %v644_v0 = vld [vmem:[%s1115_s1] ss:$0 sm:$0xff]  ;;  %vm226_vm0 = vcmask 261120   ;;  %v267_v40 = vstv %s266_s30  ;;  %vm359_vm1 = vcmask 7168  }
  0x13   : > { %s381_s7 = ssub.s32 (%p953_p4), 25, %s958_s22  ;;  %s670_s8 = smul.u32 (%p953_p4), 104, %s941_s2 }
  0x14   : > { %s643_s24 = sshll.u32 %s180_s23, 3  ;;  %p382_p8 = scmp.lt.s32.totalorder (%p953_p4), %s381_s7, 13 }
  0x15   : > { %s968_s29 = scalar_lea.vmem %s1114_s0, %s643_s24  ;;  %s1032_s11 = scalar_lea.vmem (%p953_p4), %s1117_s3, %s670_s8  }
  0x16   : > { %v193_v1 = vld [vmem:[%s968_s29] sm:$0xff]  ;;  %v195_v2 = vld [vmem:[%s968_s29 + $0x10] sm:$0xff]  ;;  %v194_v3 = vld [vmem:[%s968_s29 + $0x8] sm:$0xff] }
  0x17   : > { %v213_v4 = vmul.f32 %v644_v0, %v193_v1  ;;  %v215_v5 = vmul.f32 %v644_v0, %v195_v2  ;;  %v214_v6 = vmul.f32 %v644_v0, %v194_v3  ;;  %v196_v7 = vld [vmem:[%s968_s29 + $0x18] sm:$0xff]  ;;  %v197_v9 = vld [vmem:[%s968_s29 + $0x20] sm:$0xff]  ;;  %v198_v10 = vld [vmem:[%s968_s29 + $0x28] sm:$0xff] }
  0x18   : > { %v216_v8 = vmul.f32 %v644_v0, %v196_v7  ;;  %v217_v15 = vmul.f32 %v644_v0, %v197_v9  ;;  %v218_v16 = vmul.f32 %v644_v0, %v198_v10  ;;  %v199_v17 = vld [vmem:[%s968_s29 + $0x30] sm:$0xff]  ;;  %v200_v18 = vld [vmem:[%s968_s29 + $0x38] sm:$0xff]  ;;  %v201_v23 = vld [vmem:[%s968_s29 + $0x40] sm:$0xff] }
  0x19   : > { %v227_v11 = vsel %vm226_vm0, %v213_v4, 0.0  ;;  %v233_v12 = vsel %vm226_vm0, %v215_v5, 0.0  ;;  %v230_v13 = vsel %vm226_vm0, %v214_v6, 0.0  ;;  %v219_v21 = vmul.f32 %v644_v0, %v199_v17  ;;  %v202_v24 = vld [vmem:[%s968_s29 + $0x48] sm:$0xff]  ;;  %v203_v29 = vld [vmem:[%s968_s29 + $0x50] sm:$0xff]  ;;  %v204_v30 = vld [vmem:[%s968_s29 + $0x58] sm:$0xff] }
  0x1a   : > { %228 = vadd.xlane.f32.xlu0 %v227_v11  ;;  %234 = vadd.xlane.f32.xlu1 %v233_v12  ;;  %v236_v14 = vsel %vm226_vm0, %v216_v8, 0.0  ;;  %v239_v19 = vsel %vm226_vm0, %v217_v15, 0.0  ;;  %v242_v20 = vsel %vm226_vm0, %v218_v16, 0.0  ;;  %v220_v22 = vmul.f32 %v644_v0, %v200_v18  ;;  %v205_v35 = vld [vmem:[%s968_s29 + $0x60] sm:$0xff] }
  0x1b   : > { %v245_v25 = vsel %vm226_vm0, %v219_v21, 0.0  ;;  %v221_v27 = vmul.f32 %v644_v0, %v201_v23  ;;  %v222_v28 = vmul.f32 %v644_v0, %v202_v24  ;;  %v223_v33 = vmul.f32 %v644_v0, %v203_v29 }
  0x1c   : > { %v248_v26 = vsel %vm226_vm0, %v220_v22, 0.0  ;;  %v224_v34 = vmul.f32 %v644_v0, %v204_v30  ;;  %v225_v38 = vmul.f32 %v644_v0, %v205_v35 }
  0x1d   : > { %v251_v31 = vsel %vm226_vm0, %v221_v27, 0.0  ;;  %v254_v32 = vsel %vm226_vm0, %v222_v28, 0.0  ;;  %v257_v36 = vsel %vm226_vm0, %v223_v33, 0.0 }
  0x1e   : > { %231 = vadd.xlane.f32.xlu0 %v230_v13  ;;  %237 = vadd.xlane.f32.xlu1 %v236_v14  ;;  %v260_v37 = vsel %vm226_vm0, %v224_v34, 0.0  ;;  %v263_v39 = vsel %vm226_vm0, %v225_v38, 0.0 }
  0x22   : > { %240 = vadd.xlane.f32.xlu0 %v239_v19  ;;  %243 = vadd.xlane.f32.xlu1 %v242_v20 }
  0x26   : > { %246 = vadd.xlane.f32.xlu0 %v245_v25  ;;  %249 = vadd.xlane.f32.xlu1 %v248_v26 }
  0x2a   : > { %252 = vadd.xlane.f32.xlu0 %v251_v31  ;;  %255 = vadd.xlane.f32.xlu1 %v254_v32 }
  0x2e   : > { %258 = vadd.xlane.f32.xlu0 %v257_v36  ;;  %261 = vadd.xlane.f32.xlu1 %v260_v37 }
  0x32   : > { %264 = vadd.xlane.f32.xlu0 %v263_v39 }
  0xa3   : > { %v229_v41 = vpop.xlane.xlu0 %228  ;;  %v235_v42 = vpop.xlane.xlu1 %234 }
  0xa4   : > { %v268_v43 = vadd.f32 %v267_v40, %v229_v41  ;;  %v270_v44 = vadd.f32 %v267_v40, %v235_v42 }
  0xa6   : > { %v645_v45 = vmul.f32 -1.442695, %v268_v43  ;;  %v647_v46 = vmul.f32 -1.442695, %v270_v44 }
  0xa7   : > { %v232_v47 = vpop.xlane.xlu0 %231  ;;  %v238_v48 = vpop.xlane.xlu1 %237 }
  0xa8   : > { %761 = vpow2.f32 %v645_v45  ;;  %v269_v49 = vadd.f32 %v267_v40, %v232_v47  ;;  %v271_v50 = vadd.f32 %v267_v40, %v238_v48 }
  0xa9   : > { %763 = vpow2.f32 %v647_v46 }
  0xaa   : > { %v646_v51 = vmul.f32 -1.442695, %v269_v49  ;;  %v648_v52 = vmul.f32 -1.442695, %v271_v50 }
  0xab   : > { %v241_v53 = vpop.xlane.xlu0 %240  ;;  %v244_v54 = vpop.xlane.xlu1 %243 }
  0xac   : > { %765 = vpow2.f32 %v646_v51  ;;  %v272_v55 = vadd.f32 %v267_v40, %v241_v53  ;;  %v273_v56 = vadd.f32 %v267_v40, %v244_v54 }
  0xad   : > { %767 = vpow2.f32 %v648_v52 }
  0xae   : > { %v649_v57 = vmul.f32 -1.442695, %v272_v55  ;;  %v650_v58 = vmul.f32 -1.442695, %v273_v56 }
  0xaf   : > { %v247_v59 = vpop.xlane.xlu0 %246  ;;  %v250_v60 = vpop.xlane.xlu1 %249 }
  0xb0   : > { %769 = vpow2.f32 %v649_v57  ;;  %v274_v61 = vadd.f32 %v267_v40, %v247_v59  ;;  %v275_v62 = vadd.f32 %v267_v40, %v250_v60 }
  0xb1   : > { %771 = vpow2.f32 %v650_v58 }
  0xb2   : > { %v651_v63 = vmul.f32 -1.442695, %v274_v61  ;;  %v652_v0 = vmul.f32 -1.442695, %v275_v62 }
  0xb3   : > { %v253_v1 = vpop.xlane.xlu0 %252  ;;  %v256_v2 = vpop.xlane.xlu1 %255 }
  0xb4   : > { %773 = vpow2.f32 %v651_v63  ;;  %v276_v3 = vadd.f32 %v267_v40, %v253_v1  ;;  %v277_v4 = vadd.f32 %v267_v40, %v256_v2 }
  0xb5   : > { %v762_v5 = vpop.eup %761  ;;  %775 = vpow2.f32 %v652_v0 }
  0xb6   : > { %v764_v6 = vpop.eup %763  ;;  %v320_v7 = vadd.f32 1.0, %v762_v5  ;;  %v653_v8 = vmul.f32 -1.442695, %v276_v3  ;;  %v654_v10 = vmul.f32 -1.442695, %v277_v4 }
  0xb7   : > { %v322_v9 = vadd.f32 1.0, %v764_v6  ;;  %v259_v11 = vpop.xlane.xlu0 %258  ;;  %v262_v12 = vpop.xlane.xlu1 %261 }
  0xb8   : > { %777 = vrcp.f32 %v320_v7  ;;  %v278_v13 = vadd.f32 %v267_v40, %v259_v11  ;;  %v279_v14 = vadd.f32 %v267_v40, %v262_v12 }
  0xb9   : > { %v766_v15 = vpop.eup %765  ;;  %779 = vrcp.f32 %v322_v9 }
  0xba   : > { %v768_v16 = vpop.eup %767  ;;  %v321_v17 = vadd.f32 1.0, %v766_v15  ;;  %781 = vpow2.f32 %v653_v8  ;;  %v655_v18 = vmul.f32 -1.442695, %v278_v13  ;;  %v656_v20 = vmul.f32 -1.442695, %v279_v14 }
  0xbb   : > { %v323_v19 = vadd.f32 1.0, %v768_v16  ;;  %783 = vpow2.f32 %v654_v10  ;;  %v265_v21 = vpop.xlane.xlu0 %264 }
  0xbc   : > { %785 = vrcp.f32 %v321_v17  ;;  %v280_v22 = vadd.f32 %v267_v40, %v265_v21 }
  0xbd   : > { %v770_v23 = vpop.eup %769  ;;  %787 = vrcp.f32 %v323_v19 }
  0xbe   : > { %v772_v24 = vpop.eup %771  ;;  %v324_v25 = vadd.f32 1.0, %v770_v23  ;;  %789 = vpow2.f32 %v655_v18  ;;  %v657_v26 = vmul.f32 -1.442695, %v280_v22 }
  0xbf   : > { %v325_v27 = vadd.f32 1.0, %v772_v24  ;;  %791 = vpow2.f32 %v656_v20 }
  0xc0   : > { %793 = vrcp.f32 %v324_v25 }
  0xc1   : > { %v774_v28 = vpop.eup %773  ;;  %795 = vrcp.f32 %v325_v27 }
  0xc2   : > { %v776_v29 = vpop.eup %775  ;;  %v326_v30 = vadd.f32 1.0, %v774_v28  ;;  %797 = vpow2.f32 %v657_v26 }
  0xc3   : > { %v327_v31 = vadd.f32 1.0, %v776_v29 }
  0xc4   : > { %799 = vrcp.f32 %v326_v30 }
  0xc5   : > { %v778_v32 = vpop.eup %777  ;;  %801 = vrcp.f32 %v327_v31 }
  0xc6   : > { %v780_v33 = vpop.eup %779  ;;  %360 = vst.msk [vmem:[%s997_s6] sm:$0xff] %vm359_vm1, %v778_v32 }
  0xc7   : > { %v782_v34 = vpop.eup %781  ;;  %362 = vst.msk [vmem:[%s997_s6 + $0x10] sm:$0xff] %vm359_vm1, %v780_v33 }
  0xc8   : > { %v784_v35 = vpop.eup %783  ;;  %v328_v36 = vadd.f32 1.0, %v782_v34 }
  0xc9   : > { %v786_v37 = vpop.eup %785  ;;  %v329_v38 = vadd.f32 1.0, %v784_v35 }
  0xca   : > { %v788_v39 = vpop.eup %787  ;;  %361 = vst.msk [vmem:[%s997_s6 + $0x8] sm:$0xff] %vm359_vm1, %v786_v37  ;;  %803 = vrcp.f32 %v328_v36 }
  0xcb   : > { %v790_v40 = vpop.eup %789  ;;  %363 = vst.msk [vmem:[%s997_s6 + $0x18] sm:$0xff] %vm359_vm1, %v788_v39  ;;  %805 = vrcp.f32 %v329_v38 }
  0xcc   : > { %v792_v41 = vpop.eup %791  ;;  %v330_v42 = vadd.f32 1.0, %v790_v40 }
  0xcd   : > { %v794_v43 = vpop.eup %793  ;;  %v331_v44 = vadd.f32 1.0, %v792_v41 }
  0xce   : > { %v796_v45 = vpop.eup %795  ;;  %364 = vst.msk [vmem:[%s997_s6 + $0x20] sm:$0xff] %vm359_vm1, %v794_v43  ;;  %807 = vrcp.f32 %v330_v42 }
  0xcf   : > { %v798_v46 = vpop.eup %797  ;;  %365 = vst.msk [vmem:[%s997_s6 + $0x28] sm:$0xff] %vm359_vm1, %v796_v45  ;;  %809 = vrcp.f32 %v331_v44 }
  0xd0   : > { %v332_v47 = vadd.f32 1.0, %v798_v46 }
  0xd1   : > { %v800_v48 = vpop.eup %799 }
  0xd2   : > { %v802_v49 = vpop.eup %801  ;;  %366 = vst.msk [vmem:[%s997_s6 + $0x30] sm:$0xff] %vm359_vm1, %v800_v48  ;;  %811 = vrcp.f32 %v332_v47 }
  0xd3   : > { %367 = vst.msk [vmem:[%s997_s6 + $0x38] sm:$0xff] %vm359_vm1, %v802_v49 }
  0xd7   : > { %v804_v50 = vpop.eup %803 }
  0xd8   : > { %v806_v51 = vpop.eup %805  ;;  %368 = vst.msk [vmem:[%s997_s6 + $0x40] sm:$0xff] %vm359_vm1, %v804_v50 }
  0xd9   : > { %369 = vst.msk [vmem:[%s997_s6 + $0x48] sm:$0xff] %vm359_vm1, %v806_v51 }
  0xdb   : > { %v808_v52 = vpop.eup %807 }
  0xdc   : > { %v810_v53 = vpop.eup %809  ;;  %370 = vst.msk [vmem:[%s997_s6 + $0x50] sm:$0xff] %vm359_vm1, %v808_v52  ;;  %379 = sbr.rel (!%p953_p4) target bundleno = 278 (0x116), region = 36 }
  0xdd   : > { %371 = vst.msk [vmem:[%s997_s6 + $0x58] sm:$0xff] %vm359_vm1, %v810_v53 }
  0xdf   : > { %v812_v54 = vpop.eup %811 }
  0xe0   : > { %372 = vst.msk [vmem:[%s997_s6 + $0x60] sm:$0xff] %vm359_vm1, %v812_v54 }
  0xe1   : > { %s1126_s7 = smov (!%p382_p8, %s381_s7), 13 }
  0xe2   : > { %s658_s12 = sshll.u32 %s1126_s7, 7 }
  0xe3   : > { %p661_p9 = scmp.eq.s32.totalorder %s658_s12, 0 }
  0xe4   : > { %813 = sdivrem.u32 (!%p661_p9), %s1126_s7, 13 }
  0xe5   : > { %390 = sbr.rel (%p661_p9) target bundleno = 278 (0x116), region = 40 }
  0xed   : > { %s1038_s13 = spop.drf %813 }
  0xee   : > { %p662_p10 = scmp.le.s32.totalorder %s1038_s13, 0 }
  0xef   : > { %s1119_s14 = smov (!%p662_p10), %s1032_s11  ;;  %s1120_s16 = smov (!%p662_p10), %s997_s6 }
  0xf0   : > { %595 = sbr.rel (%p662_p10) target bundleno = 253 (0xfd), region = 116  ;;  %s1047_s2 = smov (!%p662_p10), 0  }
  0xf1   : > { %s1049_s18 = smov (!%p662_p10), 0  }
  0xf5 LB: >> { %v479_v55 = vld [vmem:[%s879_s16] sm:$0xff]  ;;  %v481_v56 = vld [vmem:[%s879_s16 + $0x8] sm:$0xff]  ;;  %v483_v57 = vld [vmem:[%s879_s16 + $0x10] sm:$0xff]  ;;  %s505_s19 = sadd.s32 1, %s883_s2  ;;  %s473_s18 = sadd.s32 1, %s887_s18   ;;  %s887_s18 = sphi %s1049_s18, %s473_s18   ;;  %s883_s2 = sphi %s1047_s2, %s1121_s2   ;;  %s879_s16 = sphi %s1120_s16, %s510_s16   ;;  %s875_s14 = sphi %s1119_s14, %s511_s14  }
  0xf6   : >> { %480 = vst [vmem:[%s875_s14] sm:$0xff] %v479_v55  ;;  %482 = vst [vmem:[%s875_s14 + $0x8] sm:$0xff] %v481_v56  ;;  %v485_v58 = vld [vmem:[%s879_s16 + $0x18] sm:$0xff]  ;;  %v487_v59 = vld [vmem:[%s879_s16 + $0x20] sm:$0xff]  ;;  %p506_p11 = scmp.ge.s32.totalorder %s505_s19, %s1038_s13  ;;  %p472_p12 = scmp.ge.s32.totalorder %s473_s18, %s1038_s13 }
  0xf7   : >> { %484 = vst [vmem:[%s875_s14 + $0x10] sm:$0xff] %v483_v57  ;;  %v489_v60 = vld [vmem:[%s879_s16 + $0x28] sm:$0xff]  ;;  %486 = vst [vmem:[%s875_s14 + $0x18] sm:$0xff] %v485_v58  ;;  %v491_v61 = vld [vmem:[%s879_s16 + $0x30] sm:$0xff] }
  0xf8   : >> { %488 = vst [vmem:[%s875_s14 + $0x20] sm:$0xff] %v487_v59  ;;  %490 = vst [vmem:[%s875_s14 + $0x28] sm:$0xff] %v489_v60  ;;  %v493_v62 = vld [vmem:[%s879_s16 + $0x38] sm:$0xff]  ;;  %v495_v63 = vld [vmem:[%s879_s16 + $0x40] sm:$0xff]  ;;  %s1128_s19 = smov (%p506_p11, %s505_s19), 0  ;;  %475 = sbr.rel (!%p472_p12) target bundleno = 245 (0xf5), region = 122 }
  0xf9   : >> { %492 = vst [vmem:[%s875_s14 + $0x30] sm:$0xff] %v491_v61  ;;  %494 = vst [vmem:[%s875_s14 + $0x38] sm:$0xff] %v493_v62  ;;  %v497_v0 = vld [vmem:[%s879_s16 + $0x48] sm:$0xff]  ;;  %v499_v1 = vld [vmem:[%s879_s16 + $0x50] sm:$0xff]  ;;  %s508_s21 = smul.u32 104, %s1128_s19  ;;  %s1121_s2 = smov %s1128_s19 }
  0xfa   : >> { %496 = vst [vmem:[%s875_s14 + $0x40] sm:$0xff] %v495_v63  ;;  %v501_v2 = vld [vmem:[%s879_s16 + $0x58] sm:$0xff]  ;;  %498 = vst [vmem:[%s875_s14 + $0x48] sm:$0xff] %v497_v0  ;;  %v503_v3 = vld [vmem:[%s879_s16 + $0x60] sm:$0xff] }
  0xfb   : >> { %500 = vst [vmem:[%s875_s14 + $0x50] sm:$0xff] %v499_v1  ;;  %502 = vst [vmem:[%s875_s14 + $0x58] sm:$0xff] %v501_v2  ;;  %s510_s16 = scalar_lea.vmem %s997_s6, %s508_s21 [#allocation3]  }
  0xfc   : >> { %504 = vst [vmem:[%s875_s14 + $0x60] sm:$0xff] %v503_v3  ;;  %s511_s14 = scalar_lea.vmem %s1032_s11, %s508_s21  }
  0xfd PF: > { %815 = sdivrem.u32 %s1126_s7, 13 }
  0xfe   : > { %s663_s22 = smul.u32 104, %s1038_s13 }
 0x100   : > { %s516_s23 = scalar_lea.vmem %s997_s6, %s663_s22 [#allocation3]   ;;  %s518_s24 = scalar_lea.vmem %s1032_s11, %s663_s22  }
 0x106   : > { %s816_s25 = spop.drf %815 }
 0x107   : > { %p665_p13 = scmp.le.s32.totalorder %s816_s25, 0 }
 0x108   : > { %s889_s26 = smov (!%p665_p13), %s518_s24   ;;  %s893_s27 = smov (!%p665_p13), %s516_s23  }
 0x109   : > { %609 = sbr.rel (%p665_p13) target bundleno = 278 (0x116), region = 127  ;;  %s897_s28 = smov (!%p665_p13), 0  }
 0x10a   : > { %s901_s29 = smov (!%p665_p13), 0  }
 0x10e LB: >> { %v528_v4 = vld [vmem:[%s895_s27] sm:$0xff]  ;;  %s530_s30 = sadd.s32 1, %s899_s28  ;;  %s522_s29 = sadd.s32 1, %s903_s29   ;;  %s903_s29 = sphi %s901_s29, %s522_s29   ;;  %s899_s28 = sphi %s897_s28, %s898_s28   ;;  %s895_s27 = sphi %s893_s27, %s535_s27   ;;  %s891_s26 = sphi %s889_s26, %s536_s26  }
 0x10f   : >> { %529 = vst [vmem:[%s891_s26] sm:$0xff] %v528_v4  ;;  %p531_p0 = scmp.ge.s32.totalorder %s530_s30, %s816_s25  ;;  %p521_p1 = scmp.ge.s32.totalorder %s522_s29, %s816_s25 }
 0x111   : >> { %s1130_s30 = smov (%p531_p0, %s530_s30), 0  ;;  %524 = sbr.rel (!%p521_p1) target bundleno = 270 (0x10e), region = 133 }
 0x112   : >> { %s666_s4 = sshll.u32 %s1130_s30, 3  ;;  %s898_s28 = smov %s1130_s30  }
 0x113   : >> { %s535_s27 = scalar_lea.vmem %s516_s23, %s666_s4 [#allocation3]   ;;  %s536_s26 = scalar_lea.vmem %s518_s24, %s666_s4  }
 0x116 PF: > { %p11_p2 = scmp.ge.s32.totalorder %s943_s17, 4   ;;  %s1122_s14 = smov %s867_s15 }
 0x117   : > { %s1123_s15 = smov %s951_s20  ;;  %s1124_s16 = smov %s943_s17 }
 0x118   :  { %13 = sbr.rel (!%p11_p2) target bundleno = 4 (0x4), region = 144 }

</bundles_post_ra>
